<compile_context>
chip_gen: v7x
topology: tpu7x:2x2x1
jax: 0.10.0
libtpu: 0.0.40
codegen_flags: <defaults>
</compile_context>

<pallas_src>
import functools

import jax
import jax.numpy as jnp
from jax.experimental import pallas as pl
from jax.experimental.pallas import tpu as pltpu

SH_DEG = 3
NUM_SH = (SH_DEG + 1) ** 2  # 16
LANES = 128

C0 = 0.28209479177387814
C1 = 0.4886025119029199
C2 = (1.0925484305920792, -1.0925484305920792, 0.31539156525252005,
      -1.0925484305920792, 0.5462742152960396)
C3 = (-0.5900435899266435, 2.890611442640554, -0.4570457994644658,
      0.3731763325901154, -0.4570457994644658, 1.445305721320277,
      -0.5900435899266435)


def color_precompute_kernel(cam_ref, xyz_ref, sh_ref, out_ref):
    """cam_ref: SMEM (3,) f32.
    xyz_ref: (3, TS, 128); sh_ref: (48, TS, 128); out_ref: (3, TS, 128).
    Every slice below is a sublane/lane-dense (TS, 128) tile.
    """
    f32 = jnp.float32

    # View direction, one dense (TS, 128) tile per component.
    dx = xyz_ref[0].astype(f32) - cam_ref[0]
    dy = xyz_ref[1].astype(f32) - cam_ref[1]
    dz = xyz_ref[2].astype(f32) - cam_ref[2]
    inv = jax.lax.rsqrt(dx * dx + dy * dy + dz * dz + 1e-12)
    x, y, z = dx * inv, dy * inv, dz * inv

    xx, yy, zz = x * x, y * y, z * z
    xy, yz, xz = x * y, y * z, x * z
    xx_m_yy = xx - yy                 # reused by C2[4] and C3[5]
    fzz_m_xx_yy = 4.0 * zz - xx - yy  # reused by C3[2] and C3[4]

    def sh_row(r):
        # Dense (TS, 128) SH-coefficient tile straight from VMEM.
        return sh_ref[r].astype(f32)

    # Degree-0 (DC) term folded into the accumulator init.
    acc = [C0 * sh_row(c * NUM_SH) for c in range(3)]

    # Degree 1..3 basis terms, built lazily (k-outer, channel-inner) so only a
    # couple of (TS, 128) temporaries are live at a time.
    basis_rest = (
        lambda: -C1 * y,
        lambda: C1 * z,
        lambda: -C1 * x,
        lambda: C2[0] * xy,
        lambda: C2[1] * yz,
        lambda: C2[2] * (2.0 * zz - xx - yy),
        lambda: C2[3] * xz,
        lambda: C2[4] * xx_m_yy,
        lambda: C3[0] * y * (3.0 * xx - yy),
        lambda: C3[1] * xy * z,
        lambda: C3[2] * y * fzz_m_xx_yy,
        lambda: C3[3] * z * (2.0 * zz - 3.0 * xx - 3.0 * yy),
        lambda: C3[4] * x * fzz_m_xx_yy,
        lambda: C3[5] * z * xx_m_yy,
        lambda: C3[6] * x * (xx - 3.0 * yy),
    )
    for k, bfn in enumerate(basis_rest, start=1):
        bk = bfn()
        for c in range(3):
            acc[c] = acc[c] + bk * sh_row(c * NUM_SH + k)

    # Dense (TS, 128) per-channel stores.
    for c in range(3):
        out_ref[c] = jnp.maximum(acc[c] + 0.5, 0.0).astype(out_ref.dtype)


def _round_up(a, b):
    return ((a + b - 1) // b) * b


@functools.partial(jax.jit, static_argnames=("tile_n", "out_dtype"))
def color_precompute(xyz_t, sh_t, cam_center, *, tile_n=8192,
                     out_dtype=jnp.float32):
    """Sublane/lane-dense SH color precompute.

    xyz_t: (3, N), sh_t: (48, N) with N on the fast axis; any float dtype
    (cast to f32 inside the kernel, so bf16 inputs halve HBM read traffic).
    cam_center: (3,).  Returns colors^T of shape (3, N) in `out_dtype`.
    """
    _, n = xyz_t.shape

    # Pad only to a multiple of 128 (needed for the 3D view); never to a
    # multiple of the tile, so large aligned inputs get zero extra copies.
    n_pad = _round_up(n, LANES)
    if n_pad != n:
        xyz_t = jnp.pad(xyz_t, ((0, 0), (0, n_pad - n)))
        sh_t = jnp.pad(sh_t, ((0, 0), (0, n_pad - n)))

    n_sub = n_pad // LANES
    xyz3 = xyz_t.reshape(3, n_sub, LANES)          # free row-major reshape
    sh3 = sh_t.reshape(3 * NUM_SH, n_sub, LANES)
    cam = cam_center.reshape(3).astype(jnp.float32)

    # Tile (in sublane-blocks of 128 lanes).  Multiple of 8 for (8,128)
    # density; clamped so moderate N still gives >=2 grid steps (megacore).
    if n_sub <= 8:
        ts = n_sub                                  # block == full dim
    else:
        ts_cap = max(8, (tile_n // LANES) // 8 * 8)
        ts = max(8, min(ts_cap, _round_up(pl.cdiv(n_sub, 2), 8)))
    grid = pl.cdiv(n_sub, ts)                       # last block may be ragged

    out = pl.pallas_call(
        color_precompute_kernel,
        out_shape=jax.ShapeDtypeStruct((3, n_sub, LANES), out_dtype),
        grid_spec=pltpu.PrefetchScalarGridSpec(
            num_scalar_prefetch=1,                  # camera center -> SMEM
            grid=(grid,),
            in_specs=[
                pl.BlockSpec((3, ts, LANES), lambda i, cam_ref: (0, i, 0)),
                pl.BlockSpec((3 * NUM_SH, ts, LANES),
                             lambda i, cam_ref: (0, i, 0)),
            ],
            out_specs=pl.BlockSpec((3, ts, LANES), lambda i, cam_ref: (0, i, 0)),
        ),
        compiler_params=pltpu.CompilerParams(
            dimension_semantics=("parallel",)),
    )(cam, xyz3, sh3)
    return out.reshape(3, n_pad)[:, :n]


# ---------------------------------------------------------------------------
# Pure-JAX reference (standard N-major layout) for correctness checking.
# ---------------------------------------------------------------------------
def _sh_basis_rows(x, y, z):
    xx, yy, zz = x * x, y * y, z * z
    xy, yz, xz = x * y, y * z, x * z
    return jnp.stack([
        jnp.full_like(x, C0),
        -C1 * y, C1 * z, -C1 * x,
        C2[0] * xy, C2[1] * yz, C2[2] * (2.0 * zz - xx - yy),
        C2[3] * xz, C2[4] * (xx - yy),
        C3[0] * y * (3.0 * xx - yy),
        C3[1] * xy * z,
        C3[2] * y * (4.0 * zz - xx - yy),
        C3[3] * z * (2.0 * zz - 3.0 * xx - 3.0 * yy),
        C3[4] * x * (4.0 * zz - xx - yy),
        C3[5] * z * (xx - yy),
        C3[6] * x * (xx - 3.0 * yy),
    ], axis=-1)  # (N, 16)


def _reference(xyz, sh, cam_center):
    d = xyz - cam_center.reshape(1, 3)
    d = d / jnp.sqrt(jnp.sum(d * d, axis=1, keepdims=True) + 1e-12)
    basis = _sh_basis_rows(d[:, 0], d[:, 1], d[:, 2])          # (N, 16)
    f = sh.reshape(-1, 3, NUM_SH)                              # (N, 3, 16)
    rgb = jnp.einsum("nk,nck->nc", basis, f) + 0.5
    return jnp.maximum(rgb, 0.0)


if __name__ == "__main__":
    key = jax.random.PRNGKey(0)
    k1, k2, k3 = jax.random.split(key, 3)

    N = 1000  # small; deliberately not a multiple of 128 to exercise padding
    xyz = jax.random.normal(k1, (N, 3), dtype=jnp.float32) * 2.0
    sh = jax.random.normal(k2, (N, 3 * NUM_SH), dtype=jnp.float32) * 0.2
    cam_center = jax.random.normal(k3, (3,), dtype=jnp.float32) * 3.0

    ref = _reference(xyz, sh, cam_center)

    # Kernel consumes/produces the feature-major (feature, N) layout; the
    # transposes here are demo-only plumbing (producers should store
    # feature-major end-to-end to avoid an HBM relayout before the kernel).
    out_t = color_precompute(xyz.T, sh.T, cam_center)
    out_t = jax.block_until_ready(out_t)
    out = out_t.T                                              # (N, 3)
    assert out.shape == (N, 3) and out.dtype == jnp.float32
    assert jnp.allclose(out, ref, atol=1e-4, rtol=1e-4), "f32 mismatch vs reference"

    # bf16-input path (halves HBM reads); kernel math stays f32, so only the
    # input quantization loosens the tolerance.
    out_bf = color_precompute(xyz.T.astype(jnp.bfloat16),
                              sh.T.astype(jnp.bfloat16), cam_center)
    out_bf = jax.block_until_ready(out_bf).T
    assert jnp.allclose(out_bf, ref, atol=5e-2, rtol=5e-2), "bf16 mismatch vs reference"

    print("KERNEL_OK")
</pallas_src>

<mosaic_0001>
module attributes {stable_mosaic.version = 11 : i64} {
  func.func @color_precompute_kernel(%arg0: i32, %arg1: memref<3xf32, #tpu.memory_space<smem>>, %arg2: memref<3x8x128xf32, #tpu.memory_space<vmem>>, %arg3: memref<48x8x128xf32, #tpu.memory_space<vmem>>, %arg4: memref<3x8x128xf32, #tpu.memory_space<vmem>>) attributes {dimension_semantics = [#tpu.dimension_semantics<parallel>], iteration_bounds = array<i64: 1>, scalar_prefetch = 1 : i64, scratch_operands = 0 : i64, tpu.core_type = #tpu.core_type<tc>, window_params = [{transform_indices = @transform_0, window_bounds = array<i64: 3, 8, 128>}, {transform_indices = @transform_1, window_bounds = array<i64: 48, 8, 128>}, {transform_indices = @transform_2, window_bounds = array<i64: 3, 8, 128>}]} {
    %c0 = arith.constant 0 : index
    %c0_0 = arith.constant 0 : index
    %c0_1 = arith.constant 0 : index
    %0 = vector.load %arg2[%c0, %c0_0, %c0_1] : memref<3x8x128xf32, #tpu.memory_space<vmem>>, vector<1x8x128xf32>
    %1 = vector.shape_cast %0 : vector<1x8x128xf32> to vector<8x128xf32>
    %c0_2 = arith.constant 0 : index
    %2 = memref.load %arg1[%c0_2] : memref<3xf32, #tpu.memory_space<smem>>
    %3 = vector.broadcast %2 : f32 to vector<8x128xf32>
    %4 = arith.subf %1, %3 : vector<8x128xf32>
    %c1 = arith.constant 1 : index
    %c0_3 = arith.constant 0 : index
    %c0_4 = arith.constant 0 : index
    %5 = vector.load %arg2[%c1, %c0_3, %c0_4] : memref<3x8x128xf32, #tpu.memory_space<vmem>>, vector<1x8x128xf32>
    %6 = vector.shape_cast %5 : vector<1x8x128xf32> to vector<8x128xf32>
    %c1_5 = arith.constant 1 : index
    %7 = memref.load %arg1[%c1_5] : memref<3xf32, #tpu.memory_space<smem>>
    %8 = vector.broadcast %7 : f32 to vector<8x128xf32>
    %9 = arith.subf %6, %8 : vector<8x128xf32>
    %c2 = arith.constant 2 : index
    %c0_6 = arith.constant 0 : index
    %c0_7 = arith.constant 0 : index
    %10 = vector.load %arg2[%c2, %c0_6, %c0_7] : memref<3x8x128xf32, #tpu.memory_space<vmem>>, vector<1x8x128xf32>
    %11 = vector.shape_cast %10 : vector<1x8x128xf32> to vector<8x128xf32>
    %c2_8 = arith.constant 2 : index
    %12 = memref.load %arg1[%c2_8] : memref<3xf32, #tpu.memory_space<smem>>
    %13 = vector.broadcast %12 : f32 to vector<8x128xf32>
    %14 = arith.subf %11, %13 : vector<8x128xf32>
    %15 = arith.mulf %4, %4 : vector<8x128xf32>
    %16 = arith.mulf %9, %9 : vector<8x128xf32>
    %17 = arith.addf %15, %16 : vector<8x128xf32>
    %18 = arith.mulf %14, %14 : vector<8x128xf32>
    %19 = arith.addf %17, %18 : vector<8x128xf32>
    %cst = arith.constant 9.99999996E-13 : f32
    %20 = vector.broadcast %cst : f32 to vector<8x128xf32>
    %21 = arith.addf %19, %20 : vector<8x128xf32>
    %22 = math.rsqrt %21 : vector<8x128xf32>
    %23 = arith.mulf %4, %22 : vector<8x128xf32>
    %24 = arith.mulf %9, %22 : vector<8x128xf32>
    %25 = arith.mulf %14, %22 : vector<8x128xf32>
    %26 = arith.mulf %23, %23 : vector<8x128xf32>
    %27 = arith.mulf %24, %24 : vector<8x128xf32>
    %28 = arith.mulf %25, %25 : vector<8x128xf32>
    %29 = arith.mulf %23, %24 : vector<8x128xf32>
    %30 = arith.mulf %24, %25 : vector<8x128xf32>
    %31 = arith.mulf %23, %25 : vector<8x128xf32>
    %32 = arith.subf %26, %27 : vector<8x128xf32>
    %cst_9 = arith.constant 4.000000e+00 : f32
    %33 = vector.broadcast %cst_9 : f32 to vector<8x128xf32>
    %34 = arith.mulf %33, %28 : vector<8x128xf32>
    %35 = arith.subf %34, %26 : vector<8x128xf32>
    %36 = arith.subf %35, %27 : vector<8x128xf32>
    %c0_10 = arith.constant 0 : index
    %c0_11 = arith.constant 0 : index
    %c0_12 = arith.constant 0 : index
    %37 = vector.load %arg3[%c0_10, %c0_11, %c0_12] : memref<48x8x128xf32, #tpu.memory_space<vmem>>, vector<1x8x128xf32>
    %38 = vector.shape_cast %37 : vector<1x8x128xf32> to vector<8x128xf32>
    %cst_13 = arith.constant 0.282094806 : f32
    %39 = vector.broadcast %cst_13 : f32 to vector<8x128xf32>
    %40 = arith.mulf %39, %38 : vector<8x128xf32>
    %c16 = arith.constant 16 : index
    %c0_14 = arith.constant 0 : index
    %c0_15 = arith.constant 0 : index
    %41 = vector.load %arg3[%c16, %c0_14, %c0_15] : memref<48x8x128xf32, #tpu.memory_space<vmem>>, vector<1x8x128xf32>
    %42 = vector.shape_cast %41 : vector<1x8x128xf32> to vector<8x128xf32>
    %cst_16 = arith.constant 0.282094806 : f32
    %43 = vector.broadcast %cst_16 : f32 to vector<8x128xf32>
    %44 = arith.mulf %43, %42 : vector<8x128xf32>
    %c32 = arith.constant 32 : index
    %c0_17 = arith.constant 0 : index
    %c0_18 = arith.constant 0 : index
    %45 = vector.load %arg3[%c32, %c0_17, %c0_18] : memref<48x8x128xf32, #tpu.memory_space<vmem>>, vector<1x8x128xf32>
    %46 = vector.shape_cast %45 : vector<1x8x128xf32> to vector<8x128xf32>
    %cst_19 = arith.constant 0.282094806 : f32
    %47 = vector.broadcast %cst_19 : f32 to vector<8x128xf32>
    %48 = arith.mulf %47, %46 : vector<8x128xf32>
    %cst_20 = arith.constant -0.488602519 : f32
    %49 = vector.broadcast %cst_20 : f32 to vector<8x128xf32>
    %50 = arith.mulf %49, %24 : vector<8x128xf32>
    %c1_21 = arith.constant 1 : index
    %c0_22 = arith.constant 0 : index
    %c0_23 = arith.constant 0 : index
    %51 = vector.load %arg3[%c1_21, %c0_22, %c0_23] : memref<48x8x128xf32, #tpu.memory_space<vmem>>, vector<1x8x128xf32>
    %52 = vector.shape_cast %51 : vector<1x8x128xf32> to vector<8x128xf32>
    %53 = arith.mulf %50, %52 : vector<8x128xf32>
    %54 = arith.addf %40, %53 : vector<8x128xf32>
    %c17 = arith.constant 17 : index
    %c0_24 = arith.constant 0 : index
    %c0_25 = arith.constant 0 : index
    %55 = vector.load %arg3[%c17, %c0_24, %c0_25] : memref<48x8x128xf32, #tpu.memory_space<vmem>>, vector<1x8x128xf32>
    %56 = vector.shape_cast %55 : vector<1x8x128xf32> to vector<8x128xf32>
    %57 = arith.mulf %50, %56 : vector<8x128xf32>
    %58 = arith.addf %44, %57 : vector<8x128xf32>
    %c33 = arith.constant 33 : index
    %c0_26 = arith.constant 0 : index
    %c0_27 = arith.constant 0 : index
    %59 = vector.load %arg3[%c33, %c0_26, %c0_27] : memref<48x8x128xf32, #tpu.memory_space<vmem>>, vector<1x8x128xf32>
    %60 = vector.shape_cast %59 : vector<1x8x128xf32> to vector<8x128xf32>
    %61 = arith.mulf %50, %60 : vector<8x128xf32>
    %62 = arith.addf %48, %61 : vector<8x128xf32>
    %cst_28 = arith.constant 0.488602519 : f32
    %63 = vector.broadcast %cst_28 : f32 to vector<8x128xf32>
    %64 = arith.mulf %63, %25 : vector<8x128xf32>
    %c2_29 = arith.constant 2 : index
    %c0_30 = arith.constant 0 : index
    %c0_31 = arith.constant 0 : index
    %65 = vector.load %arg3[%c2_29, %c0_30, %c0_31] : memref<48x8x128xf32, #tpu.memory_space<vmem>>, vector<1x8x128xf32>
    %66 = vector.shape_cast %65 : vector<1x8x128xf32> to vector<8x128xf32>
    %67 = arith.mulf %64, %66 : vector<8x128xf32>
    %68 = arith.addf %54, %67 : vector<8x128xf32>
    %c18 = arith.constant 18 : index
    %c0_32 = arith.constant 0 : index
    %c0_33 = arith.constant 0 : index
    %69 = vector.load %arg3[%c18, %c0_32, %c0_33] : memref<48x8x128xf32, #tpu.memory_space<vmem>>, vector<1x8x128xf32>
    %70 = vector.shape_cast %69 : vector<1x8x128xf32> to vector<8x128xf32>
    %71 = arith.mulf %64, %70 : vector<8x128xf32>
    %72 = arith.addf %58, %71 : vector<8x128xf32>
    %c34 = arith.constant 34 : index
    %c0_34 = arith.constant 0 : index
    %c0_35 = arith.constant 0 : index
    %73 = vector.load %arg3[%c34, %c0_34, %c0_35] : memref<48x8x128xf32, #tpu.memory_space<vmem>>, vector<1x8x128xf32>
    %74 = vector.shape_cast %73 : vector<1x8x128xf32> to vector<8x128xf32>
    %75 = arith.mulf %64, %74 : vector<8x128xf32>
    %76 = arith.addf %62, %75 : vector<8x128xf32>
    %cst_36 = arith.constant -0.488602519 : f32
    %77 = vector.broadcast %cst_36 : f32 to vector<8x128xf32>
    %78 = arith.mulf %77, %23 : vector<8x128xf32>
    %c3 = arith.constant 3 : index
    %c0_37 = arith.constant 0 : index
    %c0_38 = arith.constant 0 : index
    %79 = vector.load %arg3[%c3, %c0_37, %c0_38] : memref<48x8x128xf32, #tpu.memory_space<vmem>>, vector<1x8x128xf32>
    %80 = vector.shape_cast %79 : vector<1x8x128xf32> to vector<8x128xf32>
    %81 = arith.mulf %78, %80 : vector<8x128xf32>
    %82 = arith.addf %68, %81 : vector<8x128xf32>
    %c19 = arith.constant 19 : index
    %c0_39 = arith.constant 0 : index
    %c0_40 = arith.constant 0 : index
    %83 = vector.load %arg3[%c19, %c0_39, %c0_40] : memref<48x8x128xf32, #tpu.memory_space<vmem>>, vector<1x8x128xf32>
    %84 = vector.shape_cast %83 : vector<1x8x128xf32> to vector<8x128xf32>
    %85 = arith.mulf %78, %84 : vector<8x128xf32>
    %86 = arith.addf %72, %85 : vector<8x128xf32>
    %c35 = arith.constant 35 : index
    %c0_41 = arith.constant 0 : index
    %c0_42 = arith.constant 0 : index
    %87 = vector.load %arg3[%c35, %c0_41, %c0_42] : memref<48x8x128xf32, #tpu.memory_space<vmem>>, vector<1x8x128xf32>
    %88 = vector.shape_cast %87 : vector<1x8x128xf32> to vector<8x128xf32>
    %89 = arith.mulf %78, %88 : vector<8x128xf32>
    %90 = arith.addf %76, %89 : vector<8x128xf32>
    %cst_43 = arith.constant 1.09254849 : f32
    %91 = vector.broadcast %cst_43 : f32 to vector<8x128xf32>
    %92 = arith.mulf %91, %29 : vector<8x128xf32>
    %c4 = arith.constant 4 : index
    %c0_44 = arith.constant 0 : index
    %c0_45 = arith.constant 0 : index
    %93 = vector.load %arg3[%c4, %c0_44, %c0_45] : memref<48x8x128xf32, #tpu.memory_space<vmem>>, vector<1x8x128xf32>
    %94 = vector.shape_cast %93 : vector<1x8x128xf32> to vector<8x128xf32>
    %95 = arith.mulf %92, %94 : vector<8x128xf32>
    %96 = arith.addf %82, %95 : vector<8x128xf32>
    %c20 = arith.constant 20 : index
    %c0_46 = arith.constant 0 : index
    %c0_47 = arith.constant 0 : index
    %97 = vector.load %arg3[%c20, %c0_46, %c0_47] : memref<48x8x128xf32, #tpu.memory_space<vmem>>, vector<1x8x128xf32>
    %98 = vector.shape_cast %97 : vector<1x8x128xf32> to vector<8x128xf32>
    %99 = arith.mulf %92, %98 : vector<8x128xf32>
    %100 = arith.addf %86, %99 : vector<8x128xf32>
    %c36 = arith.constant 36 : index
    %c0_48 = arith.constant 0 : index
    %c0_49 = arith.constant 0 : index
    %101 = vector.load %arg3[%c36, %c0_48, %c0_49] : memref<48x8x128xf32, #tpu.memory_space<vmem>>, vector<1x8x128xf32>
    %102 = vector.shape_cast %101 : vector<1x8x128xf32> to vector<8x128xf32>
    %103 = arith.mulf %92, %102 : vector<8x128xf32>
    %104 = arith.addf %90, %103 : vector<8x128xf32>
    %cst_50 = arith.constant -1.09254849 : f32
    %105 = vector.broadcast %cst_50 : f32 to vector<8x128xf32>
    %106 = arith.mulf %105, %30 : vector<8x128xf32>
    %c5 = arith.constant 5 : index
    %c0_51 = arith.constant 0 : index
    %c0_52 = arith.constant 0 : index
    %107 = vector.load %arg3[%c5, %c0_51, %c0_52] : memref<48x8x128xf32, #tpu.memory_space<vmem>>, vector<1x8x128xf32>
    %108 = vector.shape_cast %107 : vector<1x8x128xf32> to vector<8x128xf32>
    %109 = arith.mulf %106, %108 : vector<8x128xf32>
    %110 = arith.addf %96, %109 : vector<8x128xf32>
    %c21 = arith.constant 21 : index
    %c0_53 = arith.constant 0 : index
    %c0_54 = arith.constant 0 : index
    %111 = vector.load %arg3[%c21, %c0_53, %c0_54] : memref<48x8x128xf32, #tpu.memory_space<vmem>>, vector<1x8x128xf32>
    %112 = vector.shape_cast %111 : vector<1x8x128xf32> to vector<8x128xf32>
    %113 = arith.mulf %106, %112 : vector<8x128xf32>
    %114 = arith.addf %100, %113 : vector<8x128xf32>
    %c37 = arith.constant 37 : index
    %c0_55 = arith.constant 0 : index
    %c0_56 = arith.constant 0 : index
    %115 = vector.load %arg3[%c37, %c0_55, %c0_56] : memref<48x8x128xf32, #tpu.memory_space<vmem>>, vector<1x8x128xf32>
    %116 = vector.shape_cast %115 : vector<1x8x128xf32> to vector<8x128xf32>
    %117 = arith.mulf %106, %116 : vector<8x128xf32>
    %118 = arith.addf %104, %117 : vector<8x128xf32>
    %cst_57 = arith.constant 2.000000e+00 : f32
    %119 = vector.broadcast %cst_57 : f32 to vector<8x128xf32>
    %120 = arith.mulf %119, %28 : vector<8x128xf32>
    %121 = arith.subf %120, %26 : vector<8x128xf32>
    %122 = arith.subf %121, %27 : vector<8x128xf32>
    %cst_58 = arith.constant 0.31539157 : f32
    %123 = vector.broadcast %cst_58 : f32 to vector<8x128xf32>
    %124 = arith.mulf %123, %122 : vector<8x128xf32>
    %c6 = arith.constant 6 : index
    %c0_59 = arith.constant 0 : index
    %c0_60 = arith.constant 0 : index
    %125 = vector.load %arg3[%c6, %c0_59, %c0_60] : memref<48x8x128xf32, #tpu.memory_space<vmem>>, vector<1x8x128xf32>
    %126 = vector.shape_cast %125 : vector<1x8x128xf32> to vector<8x128xf32>
    %127 = arith.mulf %124, %126 : vector<8x128xf32>
    %128 = arith.addf %110, %127 : vector<8x128xf32>
    %c22 = arith.constant 22 : index
    %c0_61 = arith.constant 0 : index
    %c0_62 = arith.constant 0 : index
    %129 = vector.load %arg3[%c22, %c0_61, %c0_62] : memref<48x8x128xf32, #tpu.memory_space<vmem>>, vector<1x8x128xf32>
    %130 = vector.shape_cast %129 : vector<1x8x128xf32> to vector<8x128xf32>
    %131 = arith.mulf %124, %130 : vector<8x128xf32>
    %132 = arith.addf %114, %131 : vector<8x128xf32>
    %c38 = arith.constant 38 : index
    %c0_63 = arith.constant 0 : index
    %c0_64 = arith.constant 0 : index
    %133 = vector.load %arg3[%c38, %c0_63, %c0_64] : memref<48x8x128xf32, #tpu.memory_space<vmem>>, vector<1x8x128xf32>
    %134 = vector.shape_cast %133 : vector<1x8x128xf32> to vector<8x128xf32>
    %135 = arith.mulf %124, %134 : vector<8x128xf32>
    %136 = arith.addf %118, %135 : vector<8x128xf32>
    %cst_65 = arith.constant -1.09254849 : f32
    %137 = vector.broadcast %cst_65 : f32 to vector<8x128xf32>
    %138 = arith.mulf %137, %31 : vector<8x128xf32>
    %c7 = arith.constant 7 : index
    %c0_66 = arith.constant 0 : index
    %c0_67 = arith.constant 0 : index
    %139 = vector.load %arg3[%c7, %c0_66, %c0_67] : memref<48x8x128xf32, #tpu.memory_space<vmem>>, vector<1x8x128xf32>
    %140 = vector.shape_cast %139 : vector<1x8x128xf32> to vector<8x128xf32>
    %141 = arith.mulf %138, %140 : vector<8x128xf32>
    %142 = arith.addf %128, %141 : vector<8x128xf32>
    %c23 = arith.constant 23 : index
    %c0_68 = arith.constant 0 : index
    %c0_69 = arith.constant 0 : index
    %143 = vector.load %arg3[%c23, %c0_68, %c0_69] : memref<48x8x128xf32, #tpu.memory_space<vmem>>, vector<1x8x128xf32>
    %144 = vector.shape_cast %143 : vector<1x8x128xf32> to vector<8x128xf32>
    %145 = arith.mulf %138, %144 : vector<8x128xf32>
    %146 = arith.addf %132, %145 : vector<8x128xf32>
    %c39 = arith.constant 39 : index
    %c0_70 = arith.constant 0 : index
    %c0_71 = arith.constant 0 : index
    %147 = vector.load %arg3[%c39, %c0_70, %c0_71] : memref<48x8x128xf32, #tpu.memory_space<vmem>>, vector<1x8x128xf32>
    %148 = vector.shape_cast %147 : vector<1x8x128xf32> to vector<8x128xf32>
    %149 = arith.mulf %138, %148 : vector<8x128xf32>
    %150 = arith.addf %136, %149 : vector<8x128xf32>
    %cst_72 = arith.constant 0.546274245 : f32
    %151 = vector.broadcast %cst_72 : f32 to vector<8x128xf32>
    %152 = arith.mulf %151, %32 : vector<8x128xf32>
    %c8 = arith.constant 8 : index
    %c0_73 = arith.constant 0 : index
    %c0_74 = arith.constant 0 : index
    %153 = vector.load %arg3[%c8, %c0_73, %c0_74] : memref<48x8x128xf32, #tpu.memory_space<vmem>>, vector<1x8x128xf32>
    %154 = vector.shape_cast %153 : vector<1x8x128xf32> to vector<8x128xf32>
    %155 = arith.mulf %152, %154 : vector<8x128xf32>
    %156 = arith.addf %142, %155 : vector<8x128xf32>
    %c24 = arith.constant 24 : index
    %c0_75 = arith.constant 0 : index
    %c0_76 = arith.constant 0 : index
    %157 = vector.load %arg3[%c24, %c0_75, %c0_76] : memref<48x8x128xf32, #tpu.memory_space<vmem>>, vector<1x8x128xf32>
    %158 = vector.shape_cast %157 : vector<1x8x128xf32> to vector<8x128xf32>
    %159 = arith.mulf %152, %158 : vector<8x128xf32>
    %160 = arith.addf %146, %159 : vector<8x128xf32>
    %c40 = arith.constant 40 : index
    %c0_77 = arith.constant 0 : index
    %c0_78 = arith.constant 0 : index
    %161 = vector.load %arg3[%c40, %c0_77, %c0_78] : memref<48x8x128xf32, #tpu.memory_space<vmem>>, vector<1x8x128xf32>
    %162 = vector.shape_cast %161 : vector<1x8x128xf32> to vector<8x128xf32>
    %163 = arith.mulf %152, %162 : vector<8x128xf32>
    %164 = arith.addf %150, %163 : vector<8x128xf32>
    %cst_79 = arith.constant -0.590043604 : f32
    %165 = vector.broadcast %cst_79 : f32 to vector<8x128xf32>
    %166 = arith.mulf %165, %24 : vector<8x128xf32>
    %cst_80 = arith.constant 3.000000e+00 : f32
    %167 = vector.broadcast %cst_80 : f32 to vector<8x128xf32>
    %168 = arith.mulf %167, %26 : vector<8x128xf32>
    %169 = arith.subf %168, %27 : vector<8x128xf32>
    %170 = arith.mulf %166, %169 : vector<8x128xf32>
    %c9 = arith.constant 9 : index
    %c0_81 = arith.constant 0 : index
    %c0_82 = arith.constant 0 : index
    %171 = vector.load %arg3[%c9, %c0_81, %c0_82] : memref<48x8x128xf32, #tpu.memory_space<vmem>>, vector<1x8x128xf32>
    %172 = vector.shape_cast %171 : vector<1x8x128xf32> to vector<8x128xf32>
    %173 = arith.mulf %170, %172 : vector<8x128xf32>
    %174 = arith.addf %156, %173 : vector<8x128xf32>
    %c25 = arith.constant 25 : index
    %c0_83 = arith.constant 0 : index
    %c0_84 = arith.constant 0 : index
    %175 = vector.load %arg3[%c25, %c0_83, %c0_84] : memref<48x8x128xf32, #tpu.memory_space<vmem>>, vector<1x8x128xf32>
    %176 = vector.shape_cast %175 : vector<1x8x128xf32> to vector<8x128xf32>
    %177 = arith.mulf %170, %176 : vector<8x128xf32>
    %178 = arith.addf %160, %177 : vector<8x128xf32>
    %c41 = arith.constant 41 : index
    %c0_85 = arith.constant 0 : index
    %c0_86 = arith.constant 0 : index
    %179 = vector.load %arg3[%c41, %c0_85, %c0_86] : memref<48x8x128xf32, #tpu.memory_space<vmem>>, vector<1x8x128xf32>
    %180 = vector.shape_cast %179 : vector<1x8x128xf32> to vector<8x128xf32>
    %181 = arith.mulf %170, %180 : vector<8x128xf32>
    %182 = arith.addf %164, %181 : vector<8x128xf32>
    %cst_87 = arith.constant 2.89061141 : f32
    %183 = vector.broadcast %cst_87 : f32 to vector<8x128xf32>
    %184 = arith.mulf %183, %29 : vector<8x128xf32>
    %185 = arith.mulf %184, %25 : vector<8x128xf32>
    %c10 = arith.constant 10 : index
    %c0_88 = arith.constant 0 : index
    %c0_89 = arith.constant 0 : index
    %186 = vector.load %arg3[%c10, %c0_88, %c0_89] : memref<48x8x128xf32, #tpu.memory_space<vmem>>, vector<1x8x128xf32>
    %187 = vector.shape_cast %186 : vector<1x8x128xf32> to vector<8x128xf32>
    %188 = arith.mulf %185, %187 : vector<8x128xf32>
    %189 = arith.addf %174, %188 : vector<8x128xf32>
    %c26 = arith.constant 26 : index
    %c0_90 = arith.constant 0 : index
    %c0_91 = arith.constant 0 : index
    %190 = vector.load %arg3[%c26, %c0_90, %c0_91] : memref<48x8x128xf32, #tpu.memory_space<vmem>>, vector<1x8x128xf32>
    %191 = vector.shape_cast %190 : vector<1x8x128xf32> to vector<8x128xf32>
    %192 = arith.mulf %185, %191 : vector<8x128xf32>
    %193 = arith.addf %178, %192 : vector<8x128xf32>
    %c42 = arith.constant 42 : index
    %c0_92 = arith.constant 0 : index
    %c0_93 = arith.constant 0 : index
    %194 = vector.load %arg3[%c42, %c0_92, %c0_93] : memref<48x8x128xf32, #tpu.memory_space<vmem>>, vector<1x8x128xf32>
    %195 = vector.shape_cast %194 : vector<1x8x128xf32> to vector<8x128xf32>
    %196 = arith.mulf %185, %195 : vector<8x128xf32>
    %197 = arith.addf %182, %196 : vector<8x128xf32>
    %cst_94 = arith.constant -0.457045794 : f32
    %198 = vector.broadcast %cst_94 : f32 to vector<8x128xf32>
    %199 = arith.mulf %198, %24 : vector<8x128xf32>
    %200 = arith.mulf %199, %36 : vector<8x128xf32>
    %c11 = arith.constant 11 : index
    %c0_95 = arith.constant 0 : index
    %c0_96 = arith.constant 0 : index
    %201 = vector.load %arg3[%c11, %c0_95, %c0_96] : memref<48x8x128xf32, #tpu.memory_space<vmem>>, vector<1x8x128xf32>
    %202 = vector.shape_cast %201 : vector<1x8x128xf32> to vector<8x128xf32>
    %203 = arith.mulf %200, %202 : vector<8x128xf32>
    %204 = arith.addf %189, %203 : vector<8x128xf32>
    %c27 = arith.constant 27 : index
    %c0_97 = arith.constant 0 : index
    %c0_98 = arith.constant 0 : index
    %205 = vector.load %arg3[%c27, %c0_97, %c0_98] : memref<48x8x128xf32, #tpu.memory_space<vmem>>, vector<1x8x128xf32>
    %206 = vector.shape_cast %205 : vector<1x8x128xf32> to vector<8x128xf32>
    %207 = arith.mulf %200, %206 : vector<8x128xf32>
    %208 = arith.addf %193, %207 : vector<8x128xf32>
    %c43 = arith.constant 43 : index
    %c0_99 = arith.constant 0 : index
    %c0_100 = arith.constant 0 : index
    %209 = vector.load %arg3[%c43, %c0_99, %c0_100] : memref<48x8x128xf32, #tpu.memory_space<vmem>>, vector<1x8x128xf32>
    %210 = vector.shape_cast %209 : vector<1x8x128xf32> to vector<8x128xf32>
    %211 = arith.mulf %200, %210 : vector<8x128xf32>
    %212 = arith.addf %197, %211 : vector<8x128xf32>
    %cst_101 = arith.constant 0.373176336 : f32
    %213 = vector.broadcast %cst_101 : f32 to vector<8x128xf32>
    %214 = arith.mulf %213, %25 : vector<8x128xf32>
    %cst_102 = arith.constant 2.000000e+00 : f32
    %215 = vector.broadcast %cst_102 : f32 to vector<8x128xf32>
    %216 = arith.mulf %215, %28 : vector<8x128xf32>
    %cst_103 = arith.constant 3.000000e+00 : f32
    %217 = vector.broadcast %cst_103 : f32 to vector<8x128xf32>
    %218 = arith.mulf %217, %26 : vector<8x128xf32>
    %219 = arith.subf %216, %218 : vector<8x128xf32>
    %cst_104 = arith.constant 3.000000e+00 : f32
    %220 = vector.broadcast %cst_104 : f32 to vector<8x128xf32>
    %221 = arith.mulf %220, %27 : vector<8x128xf32>
    %222 = arith.subf %219, %221 : vector<8x128xf32>
    %223 = arith.mulf %214, %222 : vector<8x128xf32>
    %c12 = arith.constant 12 : index
    %c0_105 = arith.constant 0 : index
    %c0_106 = arith.constant 0 : index
    %224 = vector.load %arg3[%c12, %c0_105, %c0_106] : memref<48x8x128xf32, #tpu.memory_space<vmem>>, vector<1x8x128xf32>
    %225 = vector.shape_cast %224 : vector<1x8x128xf32> to vector<8x128xf32>
    %226 = arith.mulf %223, %225 : vector<8x128xf32>
    %227 = arith.addf %204, %226 : vector<8x128xf32>
    %c28 = arith.constant 28 : index
    %c0_107 = arith.constant 0 : index
    %c0_108 = arith.constant 0 : index
    %228 = vector.load %arg3[%c28, %c0_107, %c0_108] : memref<48x8x128xf32, #tpu.memory_space<vmem>>, vector<1x8x128xf32>
    %229 = vector.shape_cast %228 : vector<1x8x128xf32> to vector<8x128xf32>
    %230 = arith.mulf %223, %229 : vector<8x128xf32>
    %231 = arith.addf %208, %230 : vector<8x128xf32>
    %c44 = arith.constant 44 : index
    %c0_109 = arith.constant 0 : index
    %c0_110 = arith.constant 0 : index
    %232 = vector.load %arg3[%c44, %c0_109, %c0_110] : memref<48x8x128xf32, #tpu.memory_space<vmem>>, vector<1x8x128xf32>
    %233 = vector.shape_cast %232 : vector<1x8x128xf32> to vector<8x128xf32>
    %234 = arith.mulf %223, %233 : vector<8x128xf32>
    %235 = arith.addf %212, %234 : vector<8x128xf32>
    %cst_111 = arith.constant -0.457045794 : f32
    %236 = vector.broadcast %cst_111 : f32 to vector<8x128xf32>
    %237 = arith.mulf %236, %23 : vector<8x128xf32>
    %238 = arith.mulf %237, %36 : vector<8x128xf32>
    %c13 = arith.constant 13 : index
    %c0_112 = arith.constant 0 : index
    %c0_113 = arith.constant 0 : index
    %239 = vector.load %arg3[%c13, %c0_112, %c0_113] : memref<48x8x128xf32, #tpu.memory_space<vmem>>, vector<1x8x128xf32>
    %240 = vector.shape_cast %239 : vector<1x8x128xf32> to vector<8x128xf32>
    %241 = arith.mulf %238, %240 : vector<8x128xf32>
    %242 = arith.addf %227, %241 : vector<8x128xf32>
    %c29 = arith.constant 29 : index
    %c0_114 = arith.constant 0 : index
    %c0_115 = arith.constant 0 : index
    %243 = vector.load %arg3[%c29, %c0_114, %c0_115] : memref<48x8x128xf32, #tpu.memory_space<vmem>>, vector<1x8x128xf32>
    %244 = vector.shape_cast %243 : vector<1x8x128xf32> to vector<8x128xf32>
    %245 = arith.mulf %238, %244 : vector<8x128xf32>
    %246 = arith.addf %231, %245 : vector<8x128xf32>
    %c45 = arith.constant 45 : index
    %c0_116 = arith.constant 0 : index
    %c0_117 = arith.constant 0 : index
    %247 = vector.load %arg3[%c45, %c0_116, %c0_117] : memref<48x8x128xf32, #tpu.memory_space<vmem>>, vector<1x8x128xf32>
    %248 = vector.shape_cast %247 : vector<1x8x128xf32> to vector<8x128xf32>
    %249 = arith.mulf %238, %248 : vector<8x128xf32>
    %250 = arith.addf %235, %249 : vector<8x128xf32>
    %cst_118 = arith.constant 1.44530571 : f32
    %251 = vector.broadcast %cst_118 : f32 to vector<8x128xf32>
    %252 = arith.mulf %251, %25 : vector<8x128xf32>
    %253 = arith.mulf %252, %32 : vector<8x128xf32>
    %c14 = arith.constant 14 : index
    %c0_119 = arith.constant 0 : index
    %c0_120 = arith.constant 0 : index
    %254 = vector.load %arg3[%c14, %c0_119, %c0_120] : memref<48x8x128xf32, #tpu.memory_space<vmem>>, vector<1x8x128xf32>
    %255 = vector.shape_cast %254 : vector<1x8x128xf32> to vector<8x128xf32>
    %256 = arith.mulf %253, %255 : vector<8x128xf32>
    %257 = arith.addf %242, %256 : vector<8x128xf32>
    %c30 = arith.constant 30 : index
    %c0_121 = arith.constant 0 : index
    %c0_122 = arith.constant 0 : index
    %258 = vector.load %arg3[%c30, %c0_121, %c0_122] : memref<48x8x128xf32, #tpu.memory_space<vmem>>, vector<1x8x128xf32>
    %259 = vector.shape_cast %258 : vector<1x8x128xf32> to vector<8x128xf32>
    %260 = arith.mulf %253, %259 : vector<8x128xf32>
    %261 = arith.addf %246, %260 : vector<8x128xf32>
    %c46 = arith.constant 46 : index
    %c0_123 = arith.constant 0 : index
    %c0_124 = arith.constant 0 : index
    %262 = vector.load %arg3[%c46, %c0_123, %c0_124] : memref<48x8x128xf32, #tpu.memory_space<vmem>>, vector<1x8x128xf32>
    %263 = vector.shape_cast %262 : vector<1x8x128xf32> to vector<8x128xf32>
    %264 = arith.mulf %253, %263 : vector<8x128xf32>
    %265 = arith.addf %250, %264 : vector<8x128xf32>
    %cst_125 = arith.constant -0.590043604 : f32
    %266 = vector.broadcast %cst_125 : f32 to vector<8x128xf32>
    %267 = arith.mulf %266, %23 : vector<8x128xf32>
    %cst_126 = arith.constant 3.000000e+00 : f32
    %268 = vector.broadcast %cst_126 : f32 to vector<8x128xf32>
    %269 = arith.mulf %268, %27 : vector<8x128xf32>
    %270 = arith.subf %26, %269 : vector<8x128xf32>
    %271 = arith.mulf %267, %270 : vector<8x128xf32>
    %c15 = arith.constant 15 : index
    %c0_127 = arith.constant 0 : index
    %c0_128 = arith.constant 0 : index
    %272 = vector.load %arg3[%c15, %c0_127, %c0_128] : memref<48x8x128xf32, #tpu.memory_space<vmem>>, vector<1x8x128xf32>
    %273 = vector.shape_cast %272 : vector<1x8x128xf32> to vector<8x128xf32>
    %274 = arith.mulf %271, %273 : vector<8x128xf32>
    %275 = arith.addf %257, %274 : vector<8x128xf32>
    %c31 = arith.constant 31 : index
    %c0_129 = arith.constant 0 : index
    %c0_130 = arith.constant 0 : index
    %276 = vector.load %arg3[%c31, %c0_129, %c0_130] : memref<48x8x128xf32, #tpu.memory_space<vmem>>, vector<1x8x128xf32>
    %277 = vector.shape_cast %276 : vector<1x8x128xf32> to vector<8x128xf32>
    %278 = arith.mulf %271, %277 : vector<8x128xf32>
    %279 = arith.addf %261, %278 : vector<8x128xf32>
    %c47 = arith.constant 47 : index
    %c0_131 = arith.constant 0 : index
    %c0_132 = arith.constant 0 : index
    %280 = vector.load %arg3[%c47, %c0_131, %c0_132] : memref<48x8x128xf32, #tpu.memory_space<vmem>>, vector<1x8x128xf32>
    %281 = vector.shape_cast %280 : vector<1x8x128xf32> to vector<8x128xf32>
    %282 = arith.mulf %271, %281 : vector<8x128xf32>
    %283 = arith.addf %265, %282 : vector<8x128xf32>
    %cst_133 = arith.constant 5.000000e-01 : f32
    %284 = vector.broadcast %cst_133 : f32 to vector<8x128xf32>
    %285 = arith.addf %275, %284 : vector<8x128xf32>
    %cst_134 = arith.constant 0.000000e+00 : f32
    %286 = vector.broadcast %cst_134 : f32 to vector<8x128xf32>
    %287 = arith.maximumf %285, %286 : vector<8x128xf32>
    %c0_135 = arith.constant 0 : index
    %c0_136 = arith.constant 0 : index
    %c0_137 = arith.constant 0 : index
    %288 = vector.load %arg4[%c0_135, %c0_136, %c0_137] : memref<3x8x128xf32, #tpu.memory_space<vmem>>, vector<1x8x128xf32>
    %289 = vector.shape_cast %288 : vector<1x8x128xf32> to vector<8x128xf32>
    %290 = vector.shape_cast %287 : vector<8x128xf32> to vector<1x8x128xf32>
    tpu.vector_store %arg4[%c0_135, %c0_136, %c0_137], %290 {strides = array<i32>} : memref<3x8x128xf32, #tpu.memory_space<vmem>>, vector<1x8x128xf32>,
    %cst_138 = arith.constant 5.000000e-01 : f32
    %291 = vector.broadcast %cst_138 : f32 to vector<8x128xf32>
    %292 = arith.addf %279, %291 : vector<8x128xf32>
    %cst_139 = arith.constant 0.000000e+00 : f32
    %293 = vector.broadcast %cst_139 : f32 to vector<8x128xf32>
    %294 = arith.maximumf %292, %293 : vector<8x128xf32>
    %c1_140 = arith.constant 1 : index
    %c0_141 = arith.constant 0 : index
    %c0_142 = arith.constant 0 : index
    %295 = vector.load %arg4[%c1_140, %c0_141, %c0_142] : memref<3x8x128xf32, #tpu.memory_space<vmem>>, vector<1x8x128xf32>
    %296 = vector.shape_cast %295 : vector<1x8x128xf32> to vector<8x128xf32>
    %297 = vector.shape_cast %294 : vector<8x128xf32> to vector<1x8x128xf32>
    tpu.vector_store %arg4[%c1_140, %c0_141, %c0_142], %297 {strides = array<i32>} : memref<3x8x128xf32, #tpu.memory_space<vmem>>, vector<1x8x128xf32>,
    %cst_143 = arith.constant 5.000000e-01 : f32
    %298 = vector.broadcast %cst_143 : f32 to vector<8x128xf32>
    %299 = arith.addf %283, %298 : vector<8x128xf32>
    %cst_144 = arith.constant 0.000000e+00 : f32
    %300 = vector.broadcast %cst_144 : f32 to vector<8x128xf32>
    %301 = arith.maximumf %299, %300 : vector<8x128xf32>
    %c2_145 = arith.constant 2 : index
    %c0_146 = arith.constant 0 : index
    %c0_147 = arith.constant 0 : index
    %302 = vector.load %arg4[%c2_145, %c0_146, %c0_147] : memref<3x8x128xf32, #tpu.memory_space<vmem>>, vector<1x8x128xf32>
    %303 = vector.shape_cast %302 : vector<1x8x128xf32> to vector<8x128xf32>
    %304 = vector.shape_cast %301 : vector<8x128xf32> to vector<1x8x128xf32>
    tpu.vector_store %arg4[%c2_145, %c0_146, %c0_147], %304 {strides = array<i32>} : memref<3x8x128xf32, #tpu.memory_space<vmem>>, vector<1x8x128xf32>,
    return
  }
  func.func @transform_0(%arg0: i32, %arg1: memref<3xf32, #tpu.memory_space<smem>>) -> (i32, i32, i32) {
    %c0_i32 = arith.constant 0 : i32
    %c0_i32_0 = arith.constant 0 : i32
    %c0_i32_1 = arith.constant 0 : i32
    return %c0_i32, %arg0, %c0_i32_0 : i32, i32, i32
  }
  func.func @transform_1(%arg0: i32, %arg1: memref<3xf32, #tpu.memory_space<smem>>) -> (i32, i32, i32) {
    %c0_i32 = arith.constant 0 : i32
    %c0_i32_0 = arith.constant 0 : i32
    %c0_i32_1 = arith.constant 0 : i32
    return %c0_i32, %arg0, %c0_i32_0 : i32, i32, i32
  }
  func.func @transform_2(%arg0: i32, %arg1: memref<3xf32, #tpu.memory_space<smem>>) -> (i32, i32, i32) {
    %c0_i32 = arith.constant 0 : i32
    %c0_i32_0 = arith.constant 0 : i32
    %c0_i32_1 = arith.constant 0 : i32
    return %c0_i32, %arg0, %c0_i32_0 : i32, i32, i32
  }
}

</mosaic_0001>

<bundles_post_ra>
// kernel: color_precompute.1
= control target key start
LH: loop header
LB: loop body
LE: loop exit
PB: predicated region body
PF: predicated region fallthrough
CT: control target
= control target key end

     0   :  { %s604_s0 = inlined_call_operand.vmem [shape: f32[3], index: 0, kind: input, shape index: {}]   ;;  %s605_s1 = inlined_call_operand.vmem [shape: f32[3,8,128], index: 1, kind: input, shape index: {}]   ;;  %s606_s2 = inlined_call_operand.vmem [shape: f32[48,8,128], index: 2, kind: input, shape index: {}]   ;;  %s607_s3 = inlined_call_operand.vmem [shape: f32[3,8,128], index: 3, kind: output, shape index: {}]  }
   0x1   :  { %s8_s14 = sshll.u32 %s604_s0, 4  ;;  %s9_s14 = int_to_ptr.vmem [resolvable:$true] %s8_s14 }
   0x2   :  { %s342_s15 = scalar_lea.vmem %s9_s14, 16  ;;  %p347_p1 = scmp.lt.s32.totalorder %s9_s14, %s9_s14 }
   0x3   :  { %p343_p0 = scmp.ne.s32.totalorder %s9_s14, %s342_s15  ;;  %p348_p2 = scmp.lt.s32.totalorder %s342_s15, %s342_s15 }
   0x5   :  { %p349_p3 = por %p348_p2, %p347_p1 }
   0x7   :  { %p350_p4 = pnand %p349_p3, %p343_p0 }
   0x9   :  { %353 = shalt.err (!%p350_p4)  }
   0xa   :  { %s356_s16 = smov [#allocation3]  }
   0xb   :  { %11 = dma.vmem_to_smem %s9_s14, 16, %s356_s16, [#allocation2] }
   0xc   :  { %354 = dma.done.wait [#allocation2], 16 }
   0xd   :  { %355 = vsyncadd [#allocation2], 4294967280 }
   0xe   :  { %13 = sfence }
   0xf   :  { %s19_s17 = sld [smem:[#allocation3]]  ;;  %s287_s18 = sld [smem:[#allocation3 + $0x1]]  ;;  %v18_v0 = vld [vmem:[%s605_s1] sm:$0xff]  ;;  %v286_v1 = vld [vmem:[%s605_s1 + $0x8] sm:$0xff]  ;;  %v288_v2 = vld [vmem:[%s605_s1 + $0x10] sm:$0xff] }
  0x10   :  { %s289_s19 = sld [smem:[#allocation3 + $0x2]]  ;;  %v52_v15 = vld [vmem:[%s606_s2] sm:$0xff]  ;;  %v292_v24 = vld [vmem:[%s606_s2 + $0x8] sm:$0xff]  ;;  %v295_v31 = vld [vmem:[%s606_s2 + $0x10] sm:$0xff] }
  0x11   :  { %v290_v16 = vld [vmem:[%s606_s2 + $0x80] sm:$0xff]  ;;  %v53_v22 = vmul.f32 0.2820948, %v52_v15  ;;  %v293_v25 = vld [vmem:[%s606_s2 + $0x88] sm:$0xff]  ;;  %v296_v32 = vld [vmem:[%s606_s2 + $0x90] sm:$0xff] }
  0x12   :  { %v291_v18 = vld [vmem:[%s606_s2 + $0x100] sm:$0xff]  ;;  %v56_v23 = vmul.f32 0.2820948, %v290_v16  ;;  %v294_v30 = vld [vmem:[%s606_s2 + $0x108] sm:$0xff]  ;;  %v297_v37 = vld [vmem:[%s606_s2 + $0x110] sm:$0xff] }
  0x13   :  { %v59_v29 = vmul.f32 0.2820948, %v291_v18  ;;  %v298_v38 = vld [vmem:[%s606_s2 + $0x18] sm:$0xff]  ;;  %v301_v49 = vld [vmem:[%s606_s2 + $0x20] sm:$0xff] }
  0x14   :  { %v299_v42 = vld [vmem:[%s606_s2 + $0x98] sm:$0xff]  ;;  %v302_v50 = vld [vmem:[%s606_s2 + $0xa0] sm:$0xff] }
  0x15   :  { %v20_v3 = vstv %s19_s17  ;;  %v25_v4 = vstv %s287_s18  ;;  %v300_v48 = vld [vmem:[%s606_s2 + $0x118] sm:$0xff]  ;;  %v303_v55 = vld [vmem:[%s606_s2 + $0x120] sm:$0xff] }
  0x16   :  { %v21_v5 = vsub.f32 %v18_v0, %v20_v3  ;;  %v26_v6 = vsub.f32 %v286_v1, %v25_v4  ;;  %v30_v7 = vstv %s289_s19  ;;  %v304_v4 = vld [vmem:[%s606_s2 + $0x28] sm:$0xff]  ;;  %v311_v15 = vld [vmem:[%s606_s2 + $0xb8] sm:$0xff] }
  0x17   :  { %v31_v8 = vsub.f32 %v288_v2, %v30_v7  ;;  %v312_v16 = vld [vmem:[%s606_s2 + $0x138] sm:$0xff] }
  0x18   :  { %v32_v9 = vmul.f32 %v21_v5, %v21_v5  ;;  %v33_v10 = vmul.f32 %v26_v6, %v26_v6 }
  0x19   :  { %v35_v11 = vmul.f32 %v31_v8, %v31_v8 }
  0x1a   :  { %v34_v12 = vadd.f32 %v33_v10, %v32_v9 }
  0x1c   :  { %v36_v13 = vadd.f32 %v35_v11, %v34_v12 }
  0x1e   :  { %v37_v14 = vadd.f32 1e-12, %v36_v13 }
  0x20   :  { %340 = vrsqrt.f32 %v37_v14  ;;  %v310_v14 = vld [vmem:[%s606_s2 + $0x38] sm:$0xff] }
  0x2a   :  { %v341_v17 = vpop.eup %340 }
  0x2b   :  { %v398_v19 = vmul.f32 %v341_v17, %v21_v5  ;;  %v400_v20 = vmul.f32 %v341_v17, %v26_v6  ;;  %v402_v21 = vmul.f32 %v341_v17, %v31_v8  ;;  %v305_v5 = vld [vmem:[%s606_s2 + $0xa8] sm:$0xff] }
  0x2c   :  { %v306_v6 = vld [vmem:[%s606_s2 + $0x128] sm:$0xff] }
  0x2d   :  { %v412_v26 = vmul.f32 %v398_v19, %v398_v19  ;;  %v44_v27 = vmul.f32 %v402_v21, %v402_v21  ;;  %v418_v28 = vmul.f32 %v400_v20, %v398_v19  ;;  %v431_v33 = vmul.f32 %v400_v20, %v400_v20 }
  0x2e   :  { %v46_v34 = vmul.f32 %v402_v21, %v400_v20  ;;  %v60_v35 = vmul.f32 -0.48860252, %v400_v20  ;;  %v73_v36 = vmul.f32 0.48860252, %v402_v21  ;;  %v47_v39 = vmul.f32 %v402_v21, %v398_v19 }
  0x2f   :  { %v49_v40 = vmul.f32 4.0, %v44_v27  ;;  %v86_v41 = vmul.f32 -0.48860252, %v398_v19  ;;  %v99_v43 = vmul.f32 1.0925485, %v418_v28  ;;  %v461_v51 = vsub.f32 %v412_v26, %v431_v33 }
  0x30   :  { %v63_v44 = vmul.f32 %v292_v24, %v60_v35  ;;  %v67_v45 = vmul.f32 %v293_v25, %v60_v35  ;;  %v71_v46 = vmul.f32 %v294_v30, %v60_v35  ;;  %v76_v47 = vmul.f32 %v295_v31, %v73_v36  ;;  %v313_v25 = vld [vmem:[%s606_s2 + $0x40] sm:$0xff] }
  0x31   :  { %v80_v52 = vmul.f32 %v296_v32, %v73_v36  ;;  %v84_v53 = vmul.f32 %v297_v37, %v73_v36  ;;  %v89_v54 = vmul.f32 %v298_v38, %v86_v41  ;;  %v93_v59 = vmul.f32 %v299_v42, %v86_v41  ;;  %v314_v32 = vld [vmem:[%s606_s2 + $0xc0] sm:$0xff]  ;;  %v307_v42 = vld [vmem:[%s606_s2 + $0x30] sm:$0xff] }
  0x32   :  { %v64_v56 = vadd.f32 %v63_v44, %v53_v22  ;;  %v68_v57 = vadd.f32 %v67_v45, %v56_v23  ;;  %v72_v58 = vadd.f32 %v71_v46, %v59_v29  ;;  %v50_v60 = vsub.f32 %v49_v40, %v412_v26  ;;  %v315_v38 = vld [vmem:[%s606_s2 + $0x140] sm:$0xff]  ;;  %v309_v44 = vld [vmem:[%s606_s2 + $0x130] sm:$0xff] }
  0x33   :  { %v97_v61 = vmul.f32 %v300_v48, %v86_v41  ;;  %v102_v62 = vmul.f32 %v301_v49, %v99_v43  ;;  %v106_v63 = vmul.f32 %v302_v50, %v99_v43  ;;  %v110_v3 = vmul.f32 %v303_v55, %v99_v43  ;;  %v308_v43 = vld [vmem:[%s606_s2 + $0xb0] sm:$0xff]  ;;  %v316_v50 = vld [vmem:[%s606_s2 + $0x48] sm:$0xff] }
  0x34   :  { %v77_v0 = vadd.f32 %v76_v47, %v64_v56  ;;  %v81_v1 = vadd.f32 %v80_v52, %v68_v57  ;;  %v85_v2 = vadd.f32 %v84_v53, %v72_v58  ;;  %v112_v7 = vmul.f32 -1.0925485, %v46_v34 }
  0x35   :  { %v476_v8 = vmul.f32 2.0, %v44_v27  ;;  %v141_v9 = vmul.f32 -1.0925485, %v47_v39  ;;  %v479_v10 = vmul.f32 3.0, %v412_v26  ;;  %v154_v17 = vmul.f32 0.54627424, %v461_v51 }
  0x36   :  { %v90_v11 = vadd.f32 %v89_v54, %v77_v0  ;;  %v94_v12 = vadd.f32 %v93_v59, %v81_v1  ;;  %v98_v13 = vadd.f32 %v97_v61, %v85_v2  ;;  %v115_v18 = vmul.f32 %v304_v4, %v112_v7  ;;  %v318_v61 = vld [vmem:[%s606_s2 + $0x148] sm:$0xff] }
  0x37   :  { %v119_v22 = vmul.f32 %v305_v5, %v112_v7  ;;  %v123_v23 = vmul.f32 %v306_v6, %v112_v7  ;;  %v126_v24 = vsub.f32 %v476_v8, %v412_v26  ;;  %v497_v27 = vsub.f32 %v50_v60, %v431_v33  ;;  %v317_v60 = vld [vmem:[%s606_s2 + $0xc8] sm:$0xff]  ;;  %v321_v5 = vld [vmem:[%s606_s2 + $0x150] sm:$0xff]  ;;  %v322_v6 = vld [vmem:[%s606_s2 + $0x58] sm:$0xff] }
  0x38   :  { %v103_v29 = vadd.f32 %v102_v62, %v90_v11  ;;  %v107_v30 = vadd.f32 %v106_v63, %v94_v12  ;;  %v111_v31 = vadd.f32 %v110_v3, %v98_v13  ;;  %v144_v35 = vmul.f32 %v310_v14, %v141_v9  ;;  %v320_v62 = vld [vmem:[%s606_s2 + $0xd0] sm:$0xff]  ;;  %v323_v7 = vld [vmem:[%s606_s2 + $0xd8] sm:$0xff] }
  0x39   :  { %v127_v34 = vsub.f32 %v126_v24, %v431_v33  ;;  %v148_v36 = vmul.f32 %v311_v15, %v141_v9  ;;  %v152_v37 = vmul.f32 %v312_v16, %v141_v9  ;;  %v157_v45 = vmul.f32 %v313_v25, %v154_v17 }
  0x3a   :  { %v116_v39 = vadd.f32 %v115_v18, %v103_v29  ;;  %v120_v40 = vadd.f32 %v119_v22, %v107_v30  ;;  %v124_v41 = vadd.f32 %v123_v23, %v111_v31  ;;  %v161_v47 = vmul.f32 %v314_v32, %v154_v17  ;;  %v324_v22 = vld [vmem:[%s606_s2 + $0x158] sm:$0xff]  ;;  %v325_v30 = vld [vmem:[%s606_s2 + $0x60] sm:$0xff] }
  0x3b   :  { %v128_v46 = vmul.f32 0.31539157, %v127_v34  ;;  %v167_v48 = vmul.f32 -0.5900436, %v400_v20  ;;  %v169_v49 = vsub.f32 %v479_v10, %v431_v33  ;;  %v165_v52 = vmul.f32 %v315_v38, %v154_v17  ;;  %v326_v31 = vld [vmem:[%s606_s2 + $0xe0] sm:$0xff] }
  0x3c   :  { %v183_v53 = vmul.f32 2.8906114, %v418_v28  ;;  %v197_v54 = vmul.f32 -0.4570458, %v400_v20  ;;  %v211_v55 = vmul.f32 0.37317634, %v402_v21  ;;  %v212_v0 = vsub.f32 %v476_v8, %v479_v10 }
  0x3d   :  { %v131_v56 = vmul.f32 %v307_v42, %v128_v46  ;;  %v135_v57 = vmul.f32 %v308_v43, %v128_v46  ;;  %v139_v58 = vmul.f32 %v309_v44, %v128_v46  ;;  %v170_v59 = vmul.f32 %v169_v49, %v167_v48  ;;  %v319_v28 = vld [vmem:[%s606_s2 + $0x50] sm:$0xff]  ;;  %v328_v43 = vld [vmem:[%s606_s2 + $0x68] sm:$0xff] }
  0x3e   :  { %v184_v20 = vmul.f32 %v183_v53, %v402_v21  ;;  %v198_v63 = vmul.f32 %v197_v54, %v497_v27  ;;  %v213_v1 = vmul.f32 3.0, %v431_v33  ;;  %v228_v9 = vmul.f32 -0.4570458, %v398_v19  ;;  %v331_v48 = vld [vmem:[%s606_s2 + $0x70] sm:$0xff] }
  0x3f   :  { %v132_v2 = vadd.f32 %v131_v56, %v116_v39  ;;  %v136_v3 = vadd.f32 %v135_v57, %v120_v40  ;;  %v140_v4 = vadd.f32 %v139_v58, %v124_v41  ;;  %v173_v8 = vmul.f32 %v316_v50, %v170_v59  ;;  %v332_v49 = vld [vmem:[%s606_s2 + $0xf0] sm:$0xff] }
  0x40   :  { %v177_v10 = vmul.f32 %v317_v60, %v170_v59  ;;  %v181_v33 = vmul.f32 %v318_v61, %v170_v59  ;;  %v187_v11 = vmul.f32 %v319_v28, %v184_v20  ;;  %v191_v15 = vmul.f32 %v320_v62, %v184_v20  ;;  %v333_v54 = vld [vmem:[%s606_s2 + $0x170] sm:$0xff]  ;;  %v334_v60 = vld [vmem:[%s606_s2 + $0x78] sm:$0xff] }
  0x41   :  { %v145_v12 = vadd.f32 %v144_v35, %v132_v2  ;;  %v149_v13 = vadd.f32 %v148_v36, %v136_v3  ;;  %v153_v14 = vadd.f32 %v152_v37, %v140_v4  ;;  %v195_v16 = vmul.f32 %v321_v5, %v184_v20  ;;  %v327_v35 = vld [vmem:[%s606_s2 + $0x160] sm:$0xff]  ;;  %v335_v61 = vld [vmem:[%s606_s2 + $0xf8] sm:$0xff] }
  0x42   :  { %v201_v17 = vmul.f32 %v322_v6, %v198_v63  ;;  %v205_v18 = vmul.f32 %v323_v7, %v198_v63  ;;  %v214_v23 = vsub.f32 %v212_v0, %v213_v1  ;;  %v229_v32 = vmul.f32 %v228_v9, %v497_v27  ;;  %v329_v27 = vld [vmem:[%s606_s2 + $0xe8] sm:$0xff] }
  0x43   :  { %v158_v24 = vadd.f32 %v157_v45, %v145_v12  ;;  %v162_v25 = vadd.f32 %v161_v47, %v149_v13  ;;  %v166_v29 = vadd.f32 %v165_v52, %v153_v14  ;;  %v242_v36 = vmul.f32 1.4453057, %v402_v21 }
  0x44   :  { %v215_v34 = vmul.f32 %v214_v23, %v211_v55  ;;  %v256_v37 = vmul.f32 -0.5900436, %v398_v19  ;;  %v257_v38 = vsub.f32 %v412_v26, %v213_v1  ;;  %v209_v42 = vmul.f32 %v324_v22, %v198_v63  ;;  %v330_v19 = vld [vmem:[%s606_s2 + $0x168] sm:$0xff] }
  0x45   :  { %v174_v39 = vadd.f32 %v173_v8, %v158_v24  ;;  %v178_v40 = vadd.f32 %v177_v10, %v162_v25  ;;  %v182_v41 = vadd.f32 %v181_v33, %v166_v29  ;;  %v232_v50 = vmul.f32 %v328_v43, %v229_v32 }
  0x46   :  { %v218_v44 = vmul.f32 %v325_v30, %v215_v34  ;;  %v222_v45 = vmul.f32 %v326_v31, %v215_v34  ;;  %v226_v47 = vmul.f32 %v327_v35, %v215_v34  ;;  %v236_v52 = vmul.f32 %v329_v27, %v229_v32 }
  0x47   :  { %v188_v21 = vadd.f32 %v187_v11, %v174_v39  ;;  %v192_v26 = vadd.f32 %v191_v15, %v178_v40  ;;  %v196_v46 = vadd.f32 %v195_v16, %v182_v41  ;;  %v243_v53 = vmul.f32 %v242_v36, %v461_v51  ;;  %v336_v51 = vld [vmem:[%s606_s2 + $0x178] sm:$0xff] }
  0x48   :  { %v258_v55 = vmul.f32 %v257_v38, %v256_v37  ;;  %v240_v59 = vmul.f32 %v330_v19, %v229_v32 }
  0x49   :  { %v202_v56 = vadd.f32 %v201_v17, %v188_v21  ;;  %v206_v57 = vadd.f32 %v205_v18, %v192_v26  ;;  %v210_v58 = vadd.f32 %v209_v42, %v196_v46  ;;  %v246_v28 = vmul.f32 %v331_v48, %v243_v53 }
  0x4a   :  { %v250_v20 = vmul.f32 %v332_v49, %v243_v53  ;;  %v254_v1 = vmul.f32 %v333_v54, %v243_v53  ;;  %v261_v2 = vmul.f32 %v334_v60, %v258_v55  ;;  %v265_v3 = vmul.f32 %v335_v61, %v258_v55 }
  0x4b   :  { %v219_v62 = vadd.f32 %v218_v44, %v202_v56  ;;  %v223_v63 = vadd.f32 %v222_v45, %v206_v57  ;;  %v227_v0 = vadd.f32 %v226_v47, %v210_v58  ;;  %v269_v7 = vmul.f32 %v336_v51, %v258_v55 }
  0x4d   :  { %v233_v4 = vadd.f32 %v232_v50, %v219_v62  ;;  %v237_v5 = vadd.f32 %v236_v52, %v223_v63  ;;  %v241_v6 = vadd.f32 %v240_v59, %v227_v0 }
  0x4f   :  { %v247_v9 = vadd.f32 %v246_v28, %v233_v4  ;;  %v251_v8 = vadd.f32 %v250_v20, %v237_v5  ;;  %v255_v10 = vadd.f32 %v254_v1, %v241_v6 }
  0x51   :  { %v262_v33 = vadd.f32 %v261_v2, %v247_v9  ;;  %v266_v11 = vadd.f32 %v265_v3, %v251_v8  ;;  %v270_v12 = vadd.f32 %v269_v7, %v255_v10 }
  0x53   :  { %v271_v13 = vadd.f32 0.5, %v262_v33  ;;  %v274_v14 = vadd.f32 0.5, %v266_v11  ;;  %v278_v15 = vadd.f32 0.5, %v270_v12 }
  0x55   :  { %v272_v16 = vmax.f32 %v271_v13, 0.0  ;;  %v275_v17 = vmax.f32 %v274_v14, 0.0  ;;  %v279_v18 = vmax.f32 %v278_v15, 0.0 }
  0x57   :  { %273 = vst [vmem:[%s607_s3] sm:$0xff] %v272_v16  ;;  %337 = vst [vmem:[%s607_s3 + $0x8] sm:$0xff] %v275_v17 }
  0x58   :  { %338 = vst [vmem:[%s607_s3 + $0x10] sm:$0xff] %v279_v18 }

</bundles_post_ra>
